<compile_context>
chip_gen: v5e
topology: v5e:2x2
jax: 0.10.0
libtpu: 0.0.40
codegen_flags: <defaults>
</compile_context>

<pallas_src>
import functools

import jax
import jax.numpy as jnp
from jax.experimental import pallas as pl
from jax.experimental.pallas import tpu as pltpu


def dipole_kernel(s_ref, v_ref, r_ref, wv_ref, wq_ref, bq_ref, o_ref, *,
                  mxu_dtype=None):
    # s_ref  : [TB, F]    scalar features tile                (VMEM)
    # v_ref  : [TB, 3F]   vector features tile, native flattened v[B, F, 3]
    # r_ref  : [TB, 3]    atom coordinates tile
    # wv_ref : [3F, 3]    grid-resident Wv[3f+c, c'] = w[f] * (c == c')
    # wq_ref : [1, F]     grid-resident q_atom weight row (f32)
    # bq_ref : [1, 1]     q_atom bias (SMEM scalar, f32)
    # o_ref  : [TB, 3]

    # MXU: per-component weighted feature reduction, f32 accumulation.
    v = v_ref[...]
    wv = wv_ref[...]
    if mxu_dtype is not None:  # opt-in single-pass MXU (v7x); keeps f32 acc.
        v = v.astype(mxu_dtype)
        wv = wv.astype(mxu_dtype)
    vector = jnp.dot(v, wv, preferred_element_type=jnp.float32)       # [TB, 3]

    # VPU multiply + XLU lane-reduce for q_atom: s @ Wq^T + b.
    # These slots have slack in a mem-bound kernel; shortens the MXU path.
    s32 = s_ref[...].astype(jnp.float32)
    wq32 = wq_ref[...].astype(jnp.float32)                            # [1, F]
    scalar = jnp.sum(s32 * wq32, axis=-1, keepdims=True) + bq_ref[0, 0]  # [TB, 1]

    out = vector + scalar * r_ref[...].astype(jnp.float32)            # [TB, 3]
    o_ref[...] = out.astype(o_ref.dtype)


def _round_up(x, m):
    return ((x + m - 1) // m) * m


def _vmem_capacity_bytes():
    """Best-effort trace-time VMEM query; falls back to v7x-safe 64 MiB."""
    try:
        info = pltpu.get_tpu_info()
        for name in ("vmem_capacity_bytes", "vmem_bytes", "vmem_size_bytes"):
            val = getattr(info, name, None)
            if val:
                return int(val)
    except Exception:
        pass
    return 64 * 1024 * 1024


def _vmem_budget_and_limit():
    cap = _vmem_capacity_bytes()
    if cap >= 100 * 1024 * 1024:
        # v5e / v6e: 128 MiB physical — big tiles keep us on the HBM roofline.
        return 48 * 1024 * 1024, 96 * 1024 * 1024
    # v7x (64 MiB per TC) or unknown: stay conservative.
    return 20 * 1024 * 1024, 40 * 1024 * 1024


def _choose_tile(B, F, itemsize, budget_bytes):
    """Largest B-tile that (a) fits the double-buffered VMEM budget,
    (b) is sublane-aligned for the input dtype, (c) never exceeds B, and
    (d) leaves >= 2 grid steps so v7x's two TensorCores both get work."""
    align = {4: 8, 2: 16, 1: 32}.get(itemsize, 8)
    if B <= align:
        return B  # full-dim block (allowed even when not sublane-aligned)

    bytes_per_row = (4 * F + 8) * itemsize          # v(3F) + s(F) + r + out
    tb = budget_bytes // (2 * bytes_per_row)        # 2x: double buffering
    tb = max(align, min(int(tb), 2048))
    tb = (tb // align) * align
    tb = min(tb, (B // align) * align)              # edge block <= tile <= B

    if pl.cdiv(B, tb) < 2:                          # megacore: >= 2 grid steps
        tb = min(tb, _round_up(pl.cdiv(B, 2), align))
    return tb


def dipole_moment(s, v, r_vec, w, wq, bq, *, mxu_dtype=None):
    """s: [B, F], v: [B, F, 3] (native PyTorch layout), r_vec: [B, 3].

    mxu_dtype: optional dtype (e.g. jnp.bfloat16 on v7x) for the MXU operands
    only; f32 accumulation is kept. Leave None for bit-faithful f32 math.
    """
    B, F = s.shape
    dtype = s.dtype

    # Contiguous, layout-preserving reshape (no HBM transpose of v).
    v_flat = v.reshape(B, 3 * F)                    # v_flat[b, 3f+c] = v[b, f, c]

    # Wv[3f + c, c'] = w[f] * (c == c')  ->  v_flat @ Wv == sum_f v[:, f, :] * w[f]
    eye3 = jnp.eye(3, dtype=dtype)
    wv = (w.reshape(F, 1, 1).astype(dtype) * eye3[None, :, :]).reshape(3 * F, 3)
    wq_row = wq.reshape(1, F).astype(jnp.float32)   # lane-broadcast row for VPU path
    bq_s = bq.reshape(1, 1).astype(jnp.float32)     # SMEM scalar

    budget, vmem_limit = _vmem_budget_and_limit()
    tb = _choose_tile(B, F, jnp.dtype(dtype).itemsize, budget)
    grid = (pl.cdiv(B, tb),)                        # no padding: edge block masked

    kernel = functools.partial(dipole_kernel, mxu_dtype=mxu_dtype)

    # TODO(synk): for very large F with small tb on 128-MiB parts, deepen the
    # v/s pipelines with pipeline_mode=pl.Buffered(3) (skipped here to keep the
    # tested code path minimal).
    return pl.pallas_call(
        kernel,
        out_shape=jax.ShapeDtypeStruct((B, 3), dtype),
        grid_spec=pltpu.PrefetchScalarGridSpec(
            num_scalar_prefetch=0,
            grid=grid,
            in_specs=[
                pl.BlockSpec((tb, F), lambda i: (i, 0)),            # s tile
                pl.BlockSpec((tb, 3 * F), lambda i: (i, 0)),        # v tile (flat)
                pl.BlockSpec((tb, 3), lambda i: (i, 0)),            # r_vec tile
                pl.BlockSpec((3 * F, 3), lambda i: (0, 0)),         # Wv (resident)
                pl.BlockSpec((1, F), lambda i: (0, 0)),             # wq row (resident)
                pl.BlockSpec(memory_space=pltpu.MemorySpace.SMEM),  # bq scalar
            ],
            out_specs=pl.BlockSpec((tb, 3), lambda i: (i, 0)),
        ),
        compiler_params=pltpu.CompilerParams(
            dimension_semantics=("parallel",),
            vmem_limit_bytes=vmem_limit,
        ),
    )(s, v_flat, r_vec, wv, wq_row, bq_s)


if __name__ == "__main__":
    B, F = 2, 32

    key = jax.random.PRNGKey(0)
    k_s, k_v, k_r, k_w, k_wq, k_bq = jax.random.split(key, 6)

    s = jax.random.normal(k_s, (B, F), dtype=jnp.float32)
    v = jax.random.normal(k_v, (B, F, 3), dtype=jnp.float32)
    r_vec = jax.random.normal(k_r, (B, 3), dtype=jnp.float32)

    # Parameters (non-trivial w to exercise the Wv path)
    w = 1.0 + 0.1 * jax.random.normal(k_w, (F,), dtype=jnp.float32)   # VectorLinear.weights
    wq = jax.random.normal(k_wq, (1, F), dtype=jnp.float32) * 0.1     # nn.Linear(F, 1).weight
    bq = jax.random.normal(k_bq, (1,), dtype=jnp.float32) * 0.1       # nn.Linear(F, 1).bias

    out = dipole_moment(s, v, r_vec, w, wq, bq)
    out = jax.block_until_ready(out)

    # Pure-JAX reference
    vector_ref = jnp.sum(v * w[None, :, None], axis=1)                # [B, 3]
    scalar_ref = s @ wq.T + bq                                        # [B, 1]
    ref = vector_ref + scalar_ref * r_vec

    assert out.shape == (B, 3)
    assert jnp.allclose(out, ref, atol=1e-5, rtol=1e-5), (out, ref)
    print("KERNEL_OK")
</pallas_src>

<mosaic_0001>
module attributes {stable_mosaic.version = 11 : i64} {
  func.func @dipole_kernel(%arg0: i32, %arg1: memref<2x32xf32, #tpu.memory_space<vmem>>, %arg2: memref<2x96xf32, #tpu.memory_space<vmem>>, %arg3: memref<2x3xf32, #tpu.memory_space<vmem>>, %arg4: memref<96x3xf32, #tpu.memory_space<vmem>>, %arg5: memref<1x32xf32, #tpu.memory_space<vmem>>, %arg6: memref<1x1xf32, #tpu.memory_space<smem>>, %arg7: memref<2x3xf32, #tpu.memory_space<vmem>>) attributes {dimension_semantics = [#tpu.dimension_semantics<parallel>], iteration_bounds = array<i64: 1>, scalar_prefetch = 0 : i64, scratch_operands = 0 : i64, tpu.core_type = #tpu.core_type<tc>, window_params = [{transform_indices = @transform_0, window_bounds = array<i64: 2, 32>}, {transform_indices = @transform_1, window_bounds = array<i64: 2, 96>}, {transform_indices = @transform_2, window_bounds = array<i64: 2, 3>}, {pipeline_mode = #tpu.pipeline_mode<synchronous>, transform_indices = @transform_3, window_bounds = array<i64: 96, 3>}, {pipeline_mode = #tpu.pipeline_mode<synchronous>, transform_indices = @transform_4, window_bounds = array<i64: 1, 32>}, {transform_indices = @transform_5, window_bounds = array<i64: 1, 1>}, {transform_indices = @transform_6, window_bounds = array<i64: 2, 3>}]} {
    %c0 = arith.constant 0 : index
    %c0_0 = arith.constant 0 : index
    %0 = vector.load %arg2[%c0, %c0_0] : memref<2x96xf32, #tpu.memory_space<vmem>>, vector<2x96xf32>
    %c0_1 = arith.constant 0 : index
    %c0_2 = arith.constant 0 : index
    %1 = vector.load %arg4[%c0_1, %c0_2] : memref<96x3xf32, #tpu.memory_space<vmem>>, vector<96x3xf32>
    %cst = arith.constant dense<0.000000e+00> : vector<2x3xf32>
    %2 = tpu.matmul %0, %1, %cst {dimension_numbers = #tpu.dot_dimension_numbers<[1], [0], [0], [1], [0, 0, 1, 1], [], []>} : vector<2x96xf32>, vector<96x3xf32>, vector<2x3xf32> -> vector<2x3xf32>
    %c0_3 = arith.constant 0 : index
    %c0_4 = arith.constant 0 : index
    %3 = vector.load %arg1[%c0_3, %c0_4] : memref<2x32xf32, #tpu.memory_space<vmem>>, vector<2x32xf32>
    %c0_5 = arith.constant 0 : index
    %c0_6 = arith.constant 0 : index
    %4 = vector.load %arg5[%c0_5, %c0_6] : memref<1x32xf32, #tpu.memory_space<vmem>>, vector<1x32xf32>
    %5 = vector.broadcast %4 : vector<1x32xf32> to vector<2x32xf32>
    %6 = arith.mulf %3, %5 : vector<2x32xf32>
    %cst_7 = arith.constant dense<0.000000e+00> : vector<2xf32>
    %7 = vector.multi_reduction <add>, %6, %cst_7 [1] : vector<2x32xf32> to vector<2xf32>
    %8 = vector.shape_cast %7 : vector<2xf32> to vector<2x1xf32>
    %c0_8 = arith.constant 0 : index
    %c0_9 = arith.constant 0 : index
    %9 = memref.load %arg6[%c0_8, %c0_9] : memref<1x1xf32, #tpu.memory_space<smem>>
    %10 = vector.broadcast %9 : f32 to vector<2x1xf32>
    %11 = arith.addf %8, %10 : vector<2x1xf32>
    %c0_10 = arith.constant 0 : index
    %c0_11 = arith.constant 0 : index
    %12 = vector.load %arg3[%c0_10, %c0_11] : memref<2x3xf32, #tpu.memory_space<vmem>>, vector<2x3xf32>
    %13 = vector.broadcast %11 : vector<2x1xf32> to vector<2x3xf32>
    %14 = arith.mulf %13, %12 : vector<2x3xf32>
    %15 = arith.addf %2, %14 : vector<2x3xf32>
    %c0_12 = arith.constant 0 : index
    %c0_13 = arith.constant 0 : index
    %16 = vector.load %arg7[%c0_12, %c0_13] : memref<2x3xf32, #tpu.memory_space<vmem>>, vector<2x3xf32>
    tpu.vector_store %arg7[%c0_12, %c0_13], %15 {strides = array<i32>} : memref<2x3xf32, #tpu.memory_space<vmem>>, vector<2x3xf32>,
    return
  }
  func.func @transform_0(%arg0: i32) -> (i32, i32) {
    %c0_i32 = arith.constant 0 : i32
    %c0_i32_0 = arith.constant 0 : i32
    return %arg0, %c0_i32 : i32, i32
  }
  func.func @transform_1(%arg0: i32) -> (i32, i32) {
    %c0_i32 = arith.constant 0 : i32
    %c0_i32_0 = arith.constant 0 : i32
    return %arg0, %c0_i32 : i32, i32
  }
  func.func @transform_2(%arg0: i32) -> (i32, i32) {
    %c0_i32 = arith.constant 0 : i32
    %c0_i32_0 = arith.constant 0 : i32
    return %arg0, %c0_i32 : i32, i32
  }
  func.func @transform_3(%arg0: i32) -> (i32, i32) {
    %c0_i32 = arith.constant 0 : i32
    %c0_i32_0 = arith.constant 0 : i32
    %c0_i32_1 = arith.constant 0 : i32
    return %c0_i32, %c0_i32_0 : i32, i32
  }
  func.func @transform_4(%arg0: i32) -> (i32, i32) {
    %c0_i32 = arith.constant 0 : i32
    %c0_i32_0 = arith.constant 0 : i32
    %c0_i32_1 = arith.constant 0 : i32
    return %c0_i32, %c0_i32_0 : i32, i32
  }
  func.func @transform_5(%arg0: i32) -> (i32, i32) {
    %c0_i32 = arith.constant 0 : i32
    %c0_i32_0 = arith.constant 0 : i32
    %c0_i32_1 = arith.constant 0 : i32
    return %c0_i32, %c0_i32_0 : i32, i32
  }
  func.func @transform_6(%arg0: i32) -> (i32, i32) {
    %c0_i32 = arith.constant 0 : i32
    %c0_i32_0 = arith.constant 0 : i32
    return %arg0, %c0_i32 : i32, i32
  }
}

</mosaic_0001>

<bundles_post_ra>
// kernel: tpu_custom_call.1
= control target key start
LH: loop header
LB: loop body
LE: loop exit
PB: predicated region body
PF: predicated region fallthrough
CT: control target
= control target key end

     0   :  { %s214_s0 = inlined_call_operand.vmem [shape: f32[2,32], index: 0, kind: input, shape index: {}]   ;;  %s215_s1 = inlined_call_operand.vmem [shape: f32[2,96], index: 1, kind: input, shape index: {}]   ;;  %s216_s2 = inlined_call_operand.vmem [shape: f32[2,3], index: 2, kind: input, shape index: {}]   ;;  %s217_s3 = inlined_call_operand.vmem [shape: f32[96,3], index: 3, kind: input, shape index: {}]   ;;  %s218_s4 = inlined_call_operand.vmem [shape: f32[1,32], index: 4, kind: input, shape index: {}]   ;;  %s219_s5 = inlined_call_operand.<no memory space> [shape: f32[1,1], index: 5, kind: input, shape index: {}]   ;;  %s220_s6 = inlined_call_operand.hbm [shape: f32[2,3], index: 6, kind: output, shape index: {}]  }
   0x1   :  { %v37_v0 = vld [vmem:[%s217_s3 + $0x58] sm:$0xff]  ;;  %v36_v1 = vld [vmem:[%s217_s3 + $0x50] sm:$0xff]  ;;  %v35_v2 = vld [vmem:[%s217_s3 + $0x48] sm:$0xff] }
   0x2   :  { %61 = vmatpush.msra.mxu0 %v37_v0  ;;  %v34_v3 = vld [vmem:[%s217_s3 + $0x40] sm:$0xff] }
   0x3   :  { %v38_v4 = vld [vmem:[%s214_s0] sm:$0x3] }
   0x4   :  { %62 = vmatpush.msra.mxu0 %v36_v1  ;;  %v97_v5 = vld [vmem:[%s218_s4] ss:$0 sm:$0xff] }
   0x6   :  { %63 = vmatpush.msra.mxu0 %v35_v2 }
   0x7   :  { %12 = vsyncpa [#allocation4], 0  ;;  %v33_v6 = vld [vmem:[%s217_s3 + $0x38] sm:$0xff]  ;;  %vm44_vm0 = vcmask 254976   ;;  %v43_v7 = vmul.f32 %v97_v5, %v38_v4  ;;  %v32_v8 = vld [vmem:[%s217_s3 + $0x30] sm:$0xff]  ;;  %vm53_vm1 = vcmask 785408   ;;  %v49_v18 = vstv %s219_s5 }
   0x8   :  { %64 = vmatpush.msra.mxu0 %v34_v3  ;;  %v31_v10 = vld [vmem:[%s217_s3 + $0x28] sm:$0xff]  ;;  %v30_v11 = vld [vmem:[%s217_s3 + $0x20] sm:$0xff]  ;;  %v29_v12 = vld [vmem:[%s217_s3 + $0x18] sm:$0xff]  ;;  %vm77_vm2 = vcmask 17408  }
   0x9   :  { %v45_v9 = vsel %vm44_vm0, %v43_v7, 0.0  ;;  %v28_v13 = vld [vmem:[%s217_s3 + $0x10] sm:$0xff]  ;;  %v27_v14 = vld [vmem:[%s217_s3 + $0x8] sm:$0xff]  ;;  %v26_v15 = vld [vmem:[%s217_s3] sm:$0xff]  ;;  %s124_s3 = smov [#allocation3]  }
   0xa   :  { %65 = vmatpush.msra.mxu0 %v33_v6  ;;  %46 = vadd.xlane.f32.xlu0 %v45_v9  ;;  %v25_v16 = vld [vmem:[%s215_s1] sm:$0x3]  ;;  %s84_s29 = sshll.u32 %s124_s3, 4  ;;  %s86_s1 = sshll.u32 %s220_s6, 4  ;;  %s85_s29 = int_to_ptr.vmem [resolvable:$true] %s84_s29  ;;  %s87_s1 = int_to_ptr.hbm [resolvable:$true] %s86_s1 }
   0xb   :  { %v51_v20 = vld [vmem:[%s216_s2] sm:$0x3] }
   0xc   :  { %66 = vmatpush.msra.mxu0 %v32_v8 }
   0xe   :  { %67 = vmatpush.msra.mxu0 %v31_v10 }
  0x10   :  { %68 = vmatpush.msra.mxu0 %v30_v11 }
  0x12   :  { %69 = vmatpush.msra.mxu0 %v29_v12 }
  0x14   :  { %70 = vmatpush.msra.mxu0 %v28_v13 }
  0x16   :  { %71 = vmatpush.msra.mxu0 %v27_v14 }
  0x18   :  { %72 = vmatpush.msra.mxu0 %v26_v15 }
  0x19   :  { %95 = vmatmul.msk.f32.vlgmr.msra.gmra.mxu0 %vm53_vm1, %v25_v16 }
  0x7d   :  { %v47_v17 = vpop.xlane.xlu0 %46 }
  0x7e   :  { %v50_v19 = vadd.f32 %v49_v18, %v47_v17 }
  0x80   :  { %v52_v21 = vmul.f32 %v51_v20, %v50_v19 }
  0x96   :  { %v74_v22 = vpop.f32.mrf.mxu0 }
  0x97   :  { %v75_v23 = vadd.f32 %v74_v22, %v52_v21 }
  0x99   :  { %78 = vst.msk [vmem:[#allocation3] sm:$0x3] %vm77_vm2, %v75_v23 }
  0x9a   :  { %89 = dma.vmem_to_hbm [thread:$0]  %s85_s29, 32, %s87_s1, [#allocation4]  }
  0x9b   :  { %122 = dma.done.wait [#allocation4], 32  }
  0x9c   :  { %123 = vsyncadd [#allocation4], 4294967264 }
  0x9d   :  { %94 = vsyncpa [#allocation4], 1 }

</bundles_post_ra>
